<compile_context>
chip_gen: v6e
topology: v6e:2x2x1
jax: 0.10.0
libtpu: 0.0.40
codegen_flags: <defaults>
</compile_context>

<pallas_src>
import functools

import jax
import jax.numpy as jnp
from jax import lax
from jax.experimental import pallas as pl
from jax.experimental.pallas import tpu as pltpu

LANE = 128  # lane width; feature dims are padded to multiples of this


def _round_up(x: int, m: int) -> int:
    return ((x + m - 1) // m) * m


def residual_fc_kernel(x_ref, w1_ref, b1_ref, w2_ref, b2_ref, o_ref, *,
                       hid_chunk: int, n_chunks: int):
    """One batch tile: matmul -> bias -> relu -> matmul -> bias -> residual add."""
    x = x_ref[...]                                   # (tb, in_p) f32
    xc = x.astype(w1_ref.dtype)                      # matmul-operand dtype (bf16 default)

    if n_chunks == 1:
        h = jnp.dot(xc, w1_ref[...], preferred_element_type=jnp.float32)
        h = jnp.maximum(h + b1_ref[...], 0.0)        # bias + ReLU in f32
        y = jnp.dot(h.astype(w2_ref.dtype), w2_ref[...],
                    preferred_element_type=jnp.float32)
    else:
        # Chunk the hidden dim: bounds the live (tb, chunk) intermediate and lets
        # the two matmuls' MXU passes pipeline.
        def body(c, acc):
            off = pl.multiple_of(c * hid_chunk, hid_chunk)
            hc = jnp.dot(xc, w1_ref[:, pl.ds(off, hid_chunk)],
                         preferred_element_type=jnp.float32)
            hc = jnp.maximum(hc + b1_ref[:, pl.ds(off, hid_chunk)], 0.0)
            return acc + jnp.dot(hc.astype(w2_ref.dtype),
                                 w2_ref[pl.ds(off, hid_chunk), :],
                                 preferred_element_type=jnp.float32)

        y = lax.fori_loop(0, n_chunks, body,
                          jnp.zeros(o_ref.shape, jnp.float32), unroll=True)

    # TODO(synk): nn.Dropout(p) is identity in eval mode; training-mode RNG mask
    # (pltpu.prng_random_bits + scaling) intentionally not applied here.
    o_ref[...] = x + y + b2_ref[...]                 # residual connection, f32


def prepare_residual_fc_params(w1, b1, w2, b2, *, compute_dtype=jnp.bfloat16):
    """Pad/cast the constant parameters once (lane-dense, zero padding is exact).

    w1: (in_dim, hid), b1: (hid,), w2: (hid, in_dim), b2: (in_dim,)
    (weights stored transposed vs. PyTorch so the kernel does plain x @ W).
    """
    in_dim, hid = w1.shape
    in_p, hid_p = _round_up(in_dim, LANE), _round_up(hid, LANE)

    def pad2(a, shape, dtype):
        a = a.astype(dtype)
        if a.shape == shape:
            return a
        return jnp.pad(a, ((0, shape[0] - a.shape[0]), (0, shape[1] - a.shape[1])))

    return dict(
        w1=pad2(w1, (in_p, hid_p), compute_dtype),
        w2=pad2(w2, (hid_p, in_p), compute_dtype),
        b1=pad2(b1.reshape(1, -1), (1, hid_p), jnp.float32),
        b2=pad2(b2.reshape(1, -1), (1, in_p), jnp.float32),
        in_dim=in_dim, hid=hid, in_p=in_p, hid_p=hid_p,
        compute_dtype=jnp.dtype(compute_dtype),
    )


def residual_fc(x, params, *, tb=None, hid_chunk=None):
    """ResidualFC forward.  x: (B, in_dim); params from prepare_residual_fc_params."""
    B, in_dim = x.shape
    assert in_dim == params["in_dim"], "feature dim mismatch with prepared params"
    in_p, hid_p = params["in_p"], params["hid_p"]
    compute_dtype = params["compute_dtype"]
    w_itemsize = compute_dtype.itemsize

    # Batch tile: 16-aligned for bf16 (2 rows per sublane), 8-aligned for f32.
    # Cap 256 (128 when in_p is huge, to keep VMEM headroom on v5e).  For B > 16
    # keep >= 2 grid steps so a 2-TC chip (v7x megacore) can split the batch axis.
    tb_align = 16 if w_itemsize < 4 else 8
    cap = 128 if in_p >= 2048 else 256
    if tb is None:
        bp0 = _round_up(B, tb_align)
        if B > 16 and bp0 > tb_align:
            tb = _round_up((bp0 + 1) // 2, tb_align)
        else:
            tb = bp0
        tb = min(tb, cap)
    tb = max(_round_up(tb, tb_align), tb_align)
    Bp = _round_up(max(B, tb), tb)

    # Hidden-dim chunking: only for large hid (bounds the f32 intermediate).
    if hid_chunk is None:
        hid_chunk = 512 if hid_p > 1024 else hid_p
    hid_chunk = min(_round_up(hid_chunk, LANE), hid_p)
    if hid_p % hid_chunk != 0:
        hid_chunk = hid_p
    n_chunks = hid_p // hid_chunk

    # Pad x only if needed (fast path for already-aligned shapes).
    xf = x.astype(jnp.float32)
    needs_pad = (Bp, in_p) != (B, in_dim)
    if needs_pad:
        xf = jnp.pad(xf, ((0, Bp - B), (0, in_p - in_dim)))

    # Generation-aware VMEM budget (v5e/v6e: 128 MiB, v7x: 64 MiB per TC).
    weight_bytes = 2 * in_p * hid_p * w_itemsize
    bias_bytes = (hid_p + in_p) * 4
    io_bytes = 2 * 2 * tb * in_p * 4                  # x/out tiles, double-buffered
    scratch_bytes = tb * hid_chunk * 4 + tb * in_p * 4
    needed = weight_bytes + bias_bytes + io_bytes + scratch_bytes
    try:
        vmem_cap = int(pltpu.get_tpu_info().vmem_capacity_bytes)
    except Exception:
        vmem_cap = 64 * 1024 * 1024                   # conservative (v7x per-TC)
    vmem_limit = int(min(max(int(1.5 * needed), 4 * 1024 * 1024),
                         int(0.85 * vmem_cap)))
    # TODO(synk): if weight_bytes exceeds ~half of per-core VMEM, drop whole-weight
    # residency and add a K-reduction grid axis ("arbitrary") with a pl.when-guarded
    # accumulator instead.

    # Constant (grid-independent) operands: whole-array VMEM residents, fetched
    # once, no per-step re-DMA / double-buffer copy.
    resident = pl.BlockSpec(memory_space=pltpu.MemorySpace.VMEM)

    flops = 2 * Bp * (in_p * hid_p + hid_p * in_p) + 4 * Bp * in_p + Bp * hid_p
    bytes_accessed = 2 * Bp * in_p * 4 + weight_bytes + bias_bytes
    cost = pl.CostEstimate(flops=flops, transcendentals=0,
                           bytes_accessed=bytes_accessed)

    kernel = functools.partial(residual_fc_kernel,
                               hid_chunk=hid_chunk, n_chunks=n_chunks)

    out_p = pl.pallas_call(
        kernel,
        out_shape=jax.ShapeDtypeStruct((Bp, in_p), jnp.float32),
        grid_spec=pltpu.PrefetchScalarGridSpec(
            num_scalar_prefetch=0,
            grid=(Bp // tb,),
            in_specs=[
                pl.BlockSpec((tb, in_p), lambda i: (i, 0)),   # x tile: march over batch
                resident,                                     # W1 (in_p, hid_p)
                resident,                                     # b1 (1, hid_p)
                resident,                                     # W2 (hid_p, in_p)
                resident,                                     # b2 (1, in_p)
            ],
            out_specs=pl.BlockSpec((tb, in_p), lambda i: (i, 0)),
        ),
        compiler_params=pltpu.CompilerParams(
            dimension_semantics=("parallel",),
            vmem_limit_bytes=vmem_limit,
        ),
        cost_estimate=cost,
    )(xf, params["w1"], params["b1"], params["w2"], params["b2"])

    if needs_pad:
        return out_p[:B, :in_dim]
    return out_p


if __name__ == "__main__":
    # Small shapes consistent with the module: batch=16, in_dim=32, hid=64.
    B, IN_DIM, HID = 16, 32, 64

    key = jax.random.PRNGKey(0)
    kx, k1, k2, k3, k4 = jax.random.split(key, 5)

    x = jax.random.normal(kx, (B, IN_DIM), dtype=jnp.float32)

    # Deterministic parameter init (nn.Linear stores W as (out, in); we keep the
    # transpose so the kernel computes x @ W, equivalent to PyTorch's x @ W.T).
    bound1 = 1.0 / jnp.sqrt(IN_DIM)
    bound2 = 1.0 / jnp.sqrt(HID)
    w1 = jax.random.uniform(k1, (IN_DIM, HID), jnp.float32, -bound1, bound1)
    b1 = jax.random.uniform(k2, (HID,), jnp.float32, -bound1, bound1)
    w2 = jax.random.uniform(k3, (HID, IN_DIM), jnp.float32, -bound2, bound2)
    b2 = jax.random.uniform(k4, (IN_DIM,), jnp.float32, -bound2, bound2)

    # Pure-JAX reference (eval mode: dropout == identity).
    ref = x + (jnp.maximum(x @ w1 + b1, 0.0) @ w2 + b2)

    # 1) Default path: bf16 matmul operands, f32 accumulation + f32 epilogue.
    params_bf16 = prepare_residual_fc_params(w1, b1, w2, b2)           # bf16 default
    out_bf16 = jax.block_until_ready(residual_fc(x, params_bf16))
    assert out_bf16.shape == ref.shape
    assert jnp.allclose(out_bf16, ref, atol=5e-2, rtol=5e-2), "bf16 path mismatch"

    # 2) f32-operand path: strict reference check.
    params_f32 = prepare_residual_fc_params(w1, b1, w2, b2,
                                            compute_dtype=jnp.float32)
    out_f32 = jax.block_until_ready(residual_fc(x, params_f32))
    assert jnp.allclose(out_f32, ref, atol=1e-5, rtol=1e-5), "f32 path mismatch"

    # 3) Exercise the hid-chunked accumulation path (hid=256, chunk=128, f32, strict).
    HID2 = 256
    k5, k6 = jax.random.split(k4)
    b2a = 1.0 / jnp.sqrt(HID2)
    w1b = jax.random.uniform(k5, (IN_DIM, HID2), jnp.float32, -bound1, bound1)
    b1b = jax.random.uniform(k6, (HID2,), jnp.float32, -bound1, bound1)
    w2b = jax.random.uniform(k3, (HID2, IN_DIM), jnp.float32, -b2a, b2a)
    ref2 = x + (jnp.maximum(x @ w1b + b1b, 0.0) @ w2b + b2)
    params2 = prepare_residual_fc_params(w1b, b1b, w2b, b2,
                                         compute_dtype=jnp.float32)
    out2 = jax.block_until_ready(residual_fc(x, params2, hid_chunk=128))
    assert jnp.allclose(out2, ref2, atol=1e-5, rtol=1e-5), "chunked path mismatch"

    print("KERNEL_OK")
</pallas_src>

<mosaic_0001>
module attributes {stable_mosaic.version = 11 : i64} {
  func.func @residual_fc_kernel(%arg0: i32, %arg1: memref<16x128xf32, #tpu.memory_space<vmem>>, %arg2: memref<128x128xbf16, #tpu.memory_space<vmem>>, %arg3: memref<1x128xf32, #tpu.memory_space<vmem>>, %arg4: memref<128x128xbf16, #tpu.memory_space<vmem>>, %arg5: memref<1x128xf32, #tpu.memory_space<vmem>>, %arg6: memref<16x128xf32, #tpu.memory_space<vmem>>) attributes {dimension_semantics = [#tpu.dimension_semantics<parallel>], iteration_bounds = array<i64: 1>, scalar_prefetch = 0 : i64, scratch_operands = 0 : i64, tpu.core_type = #tpu.core_type<tc>, window_params = [{transform_indices = @transform_0, window_bounds = array<i64: 16, 128>}, {pipeline_mode = #tpu.pipeline_mode<synchronous>, transform_indices = @transform_1, window_bounds = array<i64: 128, 128>}, {pipeline_mode = #tpu.pipeline_mode<synchronous>, transform_indices = @transform_2, window_bounds = array<i64: 1, 128>}, {pipeline_mode = #tpu.pipeline_mode<synchronous>, transform_indices = @transform_3, window_bounds = array<i64: 128, 128>}, {pipeline_mode = #tpu.pipeline_mode<synchronous>, transform_indices = @transform_4, window_bounds = array<i64: 1, 128>}, {transform_indices = @transform_5, window_bounds = array<i64: 16, 128>}]} {
    %c0 = arith.constant 0 : index
    %c0_0 = arith.constant 0 : index
    %0 = vector.load %arg1[%c0, %c0_0] : memref<16x128xf32, #tpu.memory_space<vmem>>, vector<16x128xf32>
    %1 = arith.truncf %0 : vector<16x128xf32> to vector<16x128xbf16>
    %c0_1 = arith.constant 0 : index
    %c0_2 = arith.constant 0 : index
    %2 = vector.load %arg2[%c0_1, %c0_2] : memref<128x128xbf16, #tpu.memory_space<vmem>>, vector<128x128xbf16>
    %cst = arith.constant dense<0.000000e+00> : vector<16x128xf32>
    %3 = tpu.matmul %1, %2, %cst {dimension_numbers = #tpu.dot_dimension_numbers<[1], [0], [0], [1], [0, 0, 1, 1], [], []>} : vector<16x128xbf16>, vector<128x128xbf16>, vector<16x128xf32> -> vector<16x128xf32>
    %c0_3 = arith.constant 0 : index
    %c0_4 = arith.constant 0 : index
    %4 = vector.load %arg3[%c0_3, %c0_4] : memref<1x128xf32, #tpu.memory_space<vmem>>, vector<1x128xf32>
    %5 = vector.broadcast %4 : vector<1x128xf32> to vector<16x128xf32>
    %6 = arith.addf %3, %5 : vector<16x128xf32>
    %cst_5 = arith.constant 0.000000e+00 : f32
    %7 = vector.broadcast %cst_5 : f32 to vector<16x128xf32>
    %8 = arith.maximumf %6, %7 : vector<16x128xf32>
    %9 = arith.truncf %8 : vector<16x128xf32> to vector<16x128xbf16>
    %c0_6 = arith.constant 0 : index
    %c0_7 = arith.constant 0 : index
    %10 = vector.load %arg4[%c0_6, %c0_7] : memref<128x128xbf16, #tpu.memory_space<vmem>>, vector<128x128xbf16>
    %cst_8 = arith.constant dense<0.000000e+00> : vector<16x128xf32>
    %11 = tpu.matmul %9, %10, %cst_8 {dimension_numbers = #tpu.dot_dimension_numbers<[1], [0], [0], [1], [0, 0, 1, 1], [], []>} : vector<16x128xbf16>, vector<128x128xbf16>, vector<16x128xf32> -> vector<16x128xf32>
    %12 = arith.addf %0, %11 : vector<16x128xf32>
    %c0_9 = arith.constant 0 : index
    %c0_10 = arith.constant 0 : index
    %13 = vector.load %arg5[%c0_9, %c0_10] : memref<1x128xf32, #tpu.memory_space<vmem>>, vector<1x128xf32>
    %14 = vector.broadcast %13 : vector<1x128xf32> to vector<16x128xf32>
    %15 = arith.addf %12, %14 : vector<16x128xf32>
    %c0_11 = arith.constant 0 : index
    %c0_12 = arith.constant 0 : index
    %16 = vector.load %arg6[%c0_11, %c0_12] : memref<16x128xf32, #tpu.memory_space<vmem>>, vector<16x128xf32>
    tpu.vector_store %arg6[%c0_11, %c0_12], %15 {strides = array<i32>} : memref<16x128xf32, #tpu.memory_space<vmem>>, vector<16x128xf32>,
    return
  }
  func.func @transform_0(%arg0: i32) -> (i32, i32) {
    %c0_i32 = arith.constant 0 : i32
    %c0_i32_0 = arith.constant 0 : i32
    return %arg0, %c0_i32 : i32, i32
  }
  func.func @transform_1(%arg0: i32) -> (i32, i32) {
    %c0_i32 = arith.constant 0 : i32
    %c0_i32_0 = arith.constant 0 : i32
    %c0_i32_1 = arith.constant 0 : i32
    return %c0_i32, %c0_i32_0 : i32, i32
  }
  func.func @transform_2(%arg0: i32) -> (i32, i32) {
    %c0_i32 = arith.constant 0 : i32
    %c0_i32_0 = arith.constant 0 : i32
    %c0_i32_1 = arith.constant 0 : i32
    return %c0_i32, %c0_i32_0 : i32, i32
  }
  func.func @transform_3(%arg0: i32) -> (i32, i32) {
    %c0_i32 = arith.constant 0 : i32
    %c0_i32_0 = arith.constant 0 : i32
    %c0_i32_1 = arith.constant 0 : i32
    return %c0_i32, %c0_i32_0 : i32, i32
  }
  func.func @transform_4(%arg0: i32) -> (i32, i32) {
    %c0_i32 = arith.constant 0 : i32
    %c0_i32_0 = arith.constant 0 : i32
    %c0_i32_1 = arith.constant 0 : i32
    return %c0_i32, %c0_i32_0 : i32, i32
  }
  func.func @transform_5(%arg0: i32) -> (i32, i32) {
    %c0_i32 = arith.constant 0 : i32
    %c0_i32_0 = arith.constant 0 : i32
    return %arg0, %c0_i32 : i32, i32
  }
}

</mosaic_0001>

<bundles_post_ra>
// kernel: tpu_custom_call.1
= control target key start
LH: loop header
LB: loop body
LE: loop exit
PB: predicated region body
PF: predicated region fallthrough
CT: control target
= control target key end

     0   :  { %10 = vsyncpa [#allocation3], 0  ;;  %s569_s0 = inlined_call_operand.hbm [shape: f32[16,128], index: 0, kind: input, shape index: {}]   ;;  %s570_s1 = inlined_call_operand.hbm [shape: bf16[128,128], index: 1, kind: input, shape index: {}]   ;;  %s571_s2 = inlined_call_operand.vmem [shape: f32[1,128], index: 2, kind: input, shape index: {}]   ;;  %s572_s3 = inlined_call_operand.hbm [shape: bf16[128,128], index: 3, kind: input, shape index: {}]   ;;  %s573_s4 = inlined_call_operand.vmem [shape: f32[1,128], index: 4, kind: input, shape index: {}]   ;;  %s574_s5 = inlined_call_operand.hbm [shape: f32[16,128], index: 5, kind: output, shape index: {}]  }
   0x1   :  { %11 = vsyncpa [#allocation6], 0 }
   0x2   :  { %12 = vsyncpa [#allocation4], 0  ;;  %s505_s18 = smov [#allocation5]  }
   0x3   :  { %s30_s19 = sshll.u32 %s505_s18, 4  ;;  %s31_s19 = int_to_ptr.vmem [resolvable:$true] %s30_s19 }
   0x4   :  { %s427_s20 = scalar_lea.vmem %s31_s19, 1024  ;;  %p432_p1 = scmp.lt.s32.totalorder %s31_s19, %s31_s19 }
   0x5   :  { %p428_p0 = scmp.ne.s32.totalorder %s31_s19, %s427_s20  ;;  %p433_p2 = scmp.lt.s32.totalorder %s427_s20, %s427_s20 }
   0x7   :  { %p434_p3 = por %p433_p2, %p432_p1 }
   0x9   :  { %p435_p4 = pnand %p434_p3, %p428_p0 }
   0xb   :  { %438 = shalt.err (!%p435_p4)
}
   0xc   :  { %s506_s21 = smov 64   ;;  %s507_s22 = smov 4  }
   0xd   :  { %36 = dma.hbm_to_vmem [thread:$0]  %s570_s1, 1024, %s31_s19, [#allocation6], %s506_s21, %s506_s21, %s507_s22  }
   0xe   :  { %s508_s25 = smov [#allocation2]  }
   0xf   :  { %s18_s26 = sshll.u32 %s508_s25, 4  ;;  %s19_s26 = int_to_ptr.vmem [resolvable:$true] %s18_s26 }
  0x10   :  { %s447_s27 = scalar_lea.vmem %s19_s26, 256  ;;  %p452_p6 = scmp.lt.s32.totalorder %s19_s26, %s19_s26 }
  0x11   :  { %p448_p5 = scmp.ne.s32.totalorder %s19_s26, %s447_s27  ;;  %p453_p7 = scmp.lt.s32.totalorder %s447_s27, %s447_s27 }
  0x13   :  { %p454_p8 = por %p453_p7, %p452_p6 }
  0x15   :  { %p455_p9 = pnand %p454_p8, %p448_p5 }
  0x17   :  { %458 = shalt.err (!%p455_p9)
}
  0x18   :  { %s509_s28 = smov 128   ;;  %s510_s29 = smov 8  }
  0x19   :  { %24 = dma.hbm_to_vmem [thread:$0]  %s569_s0, 256, %s19_s26, [#allocation3], %s509_s28, %s509_s28, %s510_s29  }
  0x1a   :  { %s511_s1 = smov [#allocation7]  }
  0x1b   :  { %s44_s7 = sshll.u32 %s511_s1, 4  ;;  %s45_s7 = int_to_ptr.vmem [resolvable:$true] %s44_s7 }
  0x1c   :  { %s467_s8 = scalar_lea.vmem %s45_s7, 1024  ;;  %p472_p11 = scmp.lt.s32.totalorder %s45_s7, %s45_s7 }
  0x1d   :  { %p468_p10 = scmp.ne.s32.totalorder %s45_s7, %s467_s8  ;;  %p473_p12 = scmp.lt.s32.totalorder %s467_s8, %s467_s8 }
  0x1f   :  { %p474_p13 = por %p473_p12, %p472_p11 }
  0x21   :  { %p475_p0 = pnand %p474_p13, %p468_p10 }
  0x23   :  { %478 = shalt.err (!%p475_p0)
}
  0x24   :  { %50 = dma.hbm_to_vmem [thread:$0]  %s572_s3, 1024, %s45_s7, [#allocation6], %s506_s21, %s506_s21, %s507_s22  }
  0x25   :  { %499 = dma.done.wait [#allocation3], 256  }
  0x26   :  { %500 = vsyncadd [#allocation3], 4294967040 }
  0x27   :  { %501 = dma.done.wait [#allocation6], 2048  }
  0x28   :  { %502 = vsyncadd [#allocation6], 4294965248  ;;  %v512_v0 = vmov 0.0   ;;  %vm513_vm0 = vmmov 0   ;;  %v403_v1 = vld [vmem:[#allocation5 + $0x38] sm:$0xff]   ;;  %v404_v2 = vld [vmem:[#allocation5 + $0x30] sm:$0xff]  }
  0x29   :  { %353 = vmatprep.subr.bf16.mxu0 %v512_v0  ;;  %369 = vmatprep.mubr.msk.bf16.mxu0 %vm513_vm0, %v512_v0  ;;  %v405_v3 = vld [vmem:[#allocation5 + $0x28] sm:$0xff]   ;;  %v411_v4 = vld [vmem:[#allocation7 + $0x38] sm:$0xff]   ;;  %v406_v5 = vld [vmem:[#allocation5 + $0x20] sm:$0xff]  }
  0x2a   :  { %373 = vmatprep.subr.bf16.mxu1 %v512_v0  ;;  %389 = vmatprep.mubr.msk.bf16.mxu1 %vm513_vm0, %v512_v0  ;;  %v412_v6 = vld [vmem:[#allocation7 + $0x30] sm:$0xff]   ;;  %v407_v7 = vld [vmem:[#allocation5 + $0x18] sm:$0xff]   ;;  %v413_v8 = vld [vmem:[#allocation7 + $0x28] sm:$0xff]  }
  0x2b   :  { %354 = vmatpush3.bf16.msra.mxu0 %v403_v1  ;;  %374 = vmatpush3.bf16.msra.mxu1 %v411_v4  ;;  %v408_v9 = vld [vmem:[#allocation5 + $0x10] sm:$0xff]   ;;  %v414_v10 = vld [vmem:[#allocation7 + $0x20] sm:$0xff]   ;;  %v409_v11 = vld [vmem:[#allocation5 + $0x8] sm:$0xff]  }
  0x2c   :  { %355 = vmatprep.subr.bf16.mxu0 %v512_v0  ;;  %375 = vmatprep.subr.bf16.mxu1 %v512_v0  ;;  %v415_v12 = vld [vmem:[#allocation7 + $0x18] sm:$0xff]   ;;  %v410_v13 = vld [vmem:[#allocation5] sm:$0xff]   ;;  %v63_v14 = vld [vmem:[#allocation2] sm:$0xff] }
  0x2d   :  { %v64_v15 = vld [vmem:[#allocation2 + $0x8] sm:$0xff]  ;;  %v416_v17 = vld [vmem:[#allocation7 + $0x10] sm:$0xff]   ;;  %v417_v18 = vld [vmem:[#allocation7 + $0x8] sm:$0xff]  }
  0x2e   :  { %v65_v16 = vpack.c.bf16 %v64_v15, %v63_v14  ;;  %v418_v19 = vld [vmem:[#allocation7] sm:$0xff]   ;;  %v317_v20 = vld [vmem:[%s571_s2] ss:$0 sm:$0xff]  ;;  %s514_s2 = smov [#allocation8]  }
  0x2f   :  { %356 = vmatpush3.bf16.msra.mxu0 %v404_v2  ;;  %376 = vmatpush3.bf16.msra.mxu1 %v412_v6  ;;  %v334_v31 = vld [vmem:[%s573_s4] ss:$0 sm:$0xff]  ;;  %s304_s13 = sshll.u32 %s514_s2, 4  ;;  %s305_s13 = int_to_ptr.vmem [resolvable:$true] %s304_s13 }
  0x30   :  { %357 = vmatprep.subr.bf16.mxu0 %v512_v0  ;;  %377 = vmatprep.subr.bf16.mxu1 %v512_v0  ;;  %s479_s14 = scalar_lea.vmem %s305_s13, 256  ;;  %p484_p2 = scmp.lt.s32.totalorder %s305_s13, %s305_s13 }
  0x31   :  { %p480_p1 = scmp.ne.s32.totalorder %s305_s13, %s479_s14  ;;  %p485_p3 = scmp.lt.s32.totalorder %s479_s14, %s479_s14 }
  0x33   :  { %358 = vmatpush3.bf16.msra.mxu0 %v405_v3  ;;  %378 = vmatpush3.bf16.msra.mxu1 %v413_v8  ;;  %p486_p4 = por %p485_p3, %p484_p2 }
  0x34   :  { %359 = vmatprep.subr.bf16.mxu0 %v512_v0  ;;  %379 = vmatprep.subr.bf16.mxu1 %v512_v0 }
  0x35   :  { %p487_p5 = pnand %p486_p4, %p480_p1 }
  0x37   :  { %360 = vmatpush3.bf16.msra.mxu0 %v406_v5  ;;  %380 = vmatpush3.bf16.msra.mxu1 %v414_v10 }
  0x38   :  { %361 = vmatprep.subr.bf16.mxu0 %v512_v0  ;;  %381 = vmatprep.subr.bf16.mxu1 %v512_v0 }
  0x3b   :  { %362 = vmatpush3.bf16.msra.mxu0 %v407_v7  ;;  %382 = vmatpush3.bf16.msra.mxu1 %v415_v12 }
  0x3c   :  { %363 = vmatprep.subr.bf16.mxu0 %v512_v0  ;;  %383 = vmatprep.subr.bf16.mxu1 %v512_v0 }
  0x3f   :  { %364 = vmatpush3.bf16.msra.mxu0 %v408_v9  ;;  %384 = vmatpush3.bf16.msra.mxu1 %v416_v17 }
  0x40   :  { %365 = vmatprep.subr.bf16.mxu0 %v512_v0  ;;  %385 = vmatprep.subr.bf16.mxu1 %v512_v0 }
  0x43   :  { %366 = vmatpush3.bf16.msra.mxu0 %v409_v11  ;;  %386 = vmatpush3.bf16.msra.mxu1 %v417_v18 }
  0x44   :  { %367 = vmatprep.subr.bf16.mxu0 %v512_v0  ;;  %387 = vmatprep.subr.bf16.mxu1 %v512_v0 }
  0x47   :  { %368 = vmatpush3.bf16.msra.mxu0 %v410_v13  ;;  %388 = vmatpush3.bf16.msra.mxu1 %v418_v19 }
  0x4a   :  { %370 = vmatmul.mubr.bf16.vlgmr.msra.gmra.mxu0 %v65_v16 }
 0x10a   :  { %v171_v21 = vpop.f32.mrf.mxu0 }
 0x10b   :  { %v172_v23 = vadd.f32 %v317_v20, %v171_v21 }
 0x10c   :  { %v371_v22 = vpop.f32.mrf.mxu0 }
 0x10d   :  { %v178_v27 = vmax.f32 %v172_v23, 0.0 }
 0x10e   :  { %v174_v24 = vpop.f32.mrf.mxu0 }
 0x10f   :  { %v175_v25 = vadd.f32 %v317_v20, %v174_v24 }
 0x110   :  { %v372_v26 = vpop.f32.mrf.mxu0 }
 0x111   :  { %v179_v28 = vmax.f32 %v175_v25, 0.0 }
 0x113   :  { %v180_v29 = vpack.c.bf16 %v179_v28, %v178_v27 }
 0x115   :  { %390 = vmatmul.mubr.bf16.vlgmr.msra.gmra.mxu1 %v180_v29 }
 0x1d5   :  { %v279_v30 = vpop.f32.mrf.mxu1 }
 0x1d6   :  { %v286_v32 = vadd.f32 %v279_v30, %v63_v14 }
 0x1d7   :  { %v391_v33 = vpop.f32.mrf.mxu1 }
 0x1d8   :  { %v295_v34 = vadd.f32 %v334_v31, %v286_v32 }
 0x1d9   :  { %v282_v35 = vpop.f32.mrf.mxu1 }
 0x1da   :  { %297 = vst [vmem:[#allocation8] sm:$0xff] %v295_v34  ;;  %v287_v36 = vadd.f32 %v282_v35, %v64_v15 }
 0x1db   :  { %v392_v37 = vpop.f32.mrf.mxu1 }
 0x1dc   :  { %v296_v38 = vadd.f32 %v334_v31, %v287_v36 }
 0x1de   :  { %298 = vst [vmem:[#allocation8 + $0x8] sm:$0xff] %v296_v38 }
 0x1df   :  { %490 = shalt.err (!%p487_p5)
}
 0x1e0   :  { %310 = dma.vmem_to_hbm [thread:$0]  %s305_s13, 256, %s574_s5, [#allocation4], %s509_s28, %s509_s28, %s510_s29  }
 0x1e1   :  { %503 = dma.done.wait [#allocation4], 256  }
 0x1e2   :  { %504 = vsyncadd [#allocation4], 4294967040 }
 0x1e3   :  { %314 = vsyncpa [#allocation3], 1 }
 0x1e4   :  { %315 = vsyncpa [#allocation6], 1 }
 0x1e5   :  { %316 = vsyncpa [#allocation4], 1 }

</bundles_post_ra>
